<compile_context>
chip_gen: v5e
topology: v5e:2x2
jax: 0.10.0
libtpu: 0.0.40
codegen_flags: <defaults>
</compile_context>

<pallas_src>
import functools

import jax
import jax.numpy as jnp
from jax.experimental import pallas as pl
from jax.experimental.pallas import tpu as pltpu


def _layernorm_f32(x, w, b, eps):
    mu = jnp.mean(x, axis=-1, keepdims=True)
    var = jnp.mean((x - mu) ** 2, axis=-1, keepdims=True)
    return (x - mu) * jax.lax.rsqrt(var + eps) * w + b


# ----------------------------------------------------------------------------
# Pallas kernel: whole decoder stack, grid = (batch, depth, ffn_tiles)
# ----------------------------------------------------------------------------
def _decoder_stack_kernel(
    x_ref,        # (S, H)       input hidden states (batch element b)
    mask_ref,     # (S, S)       additive attention mask for batch element b
    ln1_w_ref,    # (1, H) f32
    ln1_b_ref,    # (1, H) f32
    wq_ref,       # (H, H) bf16
    wk_ref,       # (H, H) bf16
    wv_ref,       # (H, H) bf16
    wo_ref,       # (H, H) bf16
    ln2_w_ref,    # (1, H) f32
    ln2_b_ref,    # (1, H) f32
    w1_ref,       # (H, TILE_F) bf16
    w2_ref,       # (TILE_F, H) bf16
    o_ref,        # (S, H)       output hidden states
    h_scratch,    # (S, H) f32   residual stream (persists across depth & F tiles)
    tmp_scratch,  # (S, H) f32   attention context assembly, then LN2 output
    acc_scratch,  # (S, H) f32   FFN down-projection accumulator
    *,
    num_heads: int,
    head_dim: int,
    eps: float,
):
    layer = pl.program_id(1)
    ftile = pl.program_id(2)
    n_layers = pl.num_programs(1)
    n_ftiles = pl.num_programs(2)

    # ---- load this batch element's hidden states into the resident stream ----
    @pl.when(jnp.logical_and(layer == 0, ftile == 0))
    def _():
        h_scratch[...] = x_ref[...].astype(jnp.float32)

    # ---- attention + LN2 (once per layer, at the first FFN tile) ----
    @pl.when(ftile == 0)
    def _():
        x = h_scratch[...]                                               # (S, H) f32
        xn = _layernorm_f32(x, ln1_w_ref[...], ln1_b_ref[...], eps)
        xn16 = xn.astype(jnp.bfloat16)

        scale = 1.0 / (head_dim ** 0.5)
        # bf16 MXU operands, f32 accumulation; fold 1/sqrt(hd) into q.
        q = jnp.dot(xn16, wq_ref[...], preferred_element_type=jnp.float32) * scale
        k = jnp.dot(xn16, wk_ref[...], preferred_element_type=jnp.float32)
        v = jnp.dot(xn16, wv_ref[...], preferred_element_type=jnp.float32)
        q16 = q.astype(jnp.bfloat16)
        k16 = k.astype(jnp.bfloat16)
        v16 = v.astype(jnp.bfloat16)
        mask = mask_ref[...].astype(jnp.float32)                         # (S, S) f32

        for h in range(num_heads):
            lo = h * head_dim
            hi = lo + head_dim
            qh = q16[:, lo:hi]
            kh = k16[:, lo:hi]
            vh = v16[:, lo:hi]
            # q @ k^T via dot_general contracting dims (no transposed copy).
            scores = jax.lax.dot_general(
                qh, kh, (((1,), (1,)), ((), ())),
                preferred_element_type=jnp.float32) + mask               # (S, S) f32
            m = jnp.max(scores, axis=-1, keepdims=True)
            p = jnp.exp(scores - m)
            denom = jnp.sum(p, axis=-1, keepdims=True)
            p = p * pl.reciprocal(denom, approx=True)                    # EUP divide
            ctx = jnp.dot(p.astype(jnp.bfloat16), vh,
                          preferred_element_type=jnp.float32)            # (S, hd)
            tmp_scratch[:, lo:hi] = ctx      # assemble (S, H) context, no concat

        attn_out = jnp.dot(tmp_scratch[...].astype(jnp.bfloat16), wo_ref[...],
                           preferred_element_type=jnp.float32)
        h1 = x + attn_out                                                # residual 1
        h_scratch[...] = h1

        hn = _layernorm_f32(h1, ln2_w_ref[...], ln2_b_ref[...], eps)
        tmp_scratch[...] = hn                # reuse scratch as the FFN input
        acc_scratch[...] = jnp.zeros_like(acc_scratch)

    # ---- FFN tile: up-project, GELU, accumulate down-projection ----
    up = jnp.dot(tmp_scratch[...].astype(jnp.bfloat16), w1_ref[...],
                 preferred_element_type=jnp.float32)                     # (S, TILE_F)
    up = jax.nn.gelu(up, approximate=True)   # TODO(synk): torch nn.GELU default is erf
    acc_scratch[...] += jnp.dot(up.astype(jnp.bfloat16), w2_ref[...],
                                preferred_element_type=jnp.float32)

    # ---- close the layer: second residual ----
    @pl.when(ftile == n_ftiles - 1)
    def _():
        h_scratch[...] = h_scratch[...] + acc_scratch[...]

    # ---- write final hidden states after the last layer ----
    @pl.when(jnp.logical_and(ftile == n_ftiles - 1, layer == n_layers - 1))
    def _():
        o_ref[...] = h_scratch[...].astype(o_ref.dtype)


# ----------------------------------------------------------------------------
# VMEM budgeting / tile selection
# ----------------------------------------------------------------------------
def _vmem_bytes_estimate(S, H, tile_f, io_itemsize):
    weights = (4 * H * H + 2 * H * tile_f) * 2 + 4 * H * 4    # bf16 mats + f32 LN params
    act_io = 2 * S * H * io_itemsize + S * S * 4              # x block + out block + mask
    scratch = 3 * S * H * 4                                    # f32 scratches
    temps = (2 * S * S + 2 * S * tile_f + 8 * S * H) * 4       # scores, FFN up, misc f32
    return 2 * (weights + act_io) + scratch + temps            # x2 double-buffering


def _pick_tile_f(F, S, H, io_itemsize, budget=40 * 1024 * 1024):
    # largest 128-multiple tile of F that keeps the estimate under ~40 MiB
    # (fits v7x's 64 MiB VMEM with headroom; v5e/v6e have 128 MiB).
    for cand in (2048, 1024, 512, 256, 128):
        if F % cand == 0 and _vmem_bytes_estimate(S, H, cand, io_itemsize) <= budget:
            return cand
    return F   # tiny / oddly-shaped FFN: keep it fully resident


# ----------------------------------------------------------------------------
# pallas_call wrapper: whole decoder stack in one call
# ----------------------------------------------------------------------------
def praxis_decoder_forward(x, attention_mask, params, *, num_heads, eps=1e-5):
    B, S, H = x.shape
    depth = params["wq"].shape[0]
    F = params["w1"].shape[-1]
    head_dim = H // num_heads
    assert num_heads * head_dim == H

    tile_f = _pick_tile_f(F, S, H, x.dtype.itemsize)
    n_ftiles = F // tile_f

    kernel = functools.partial(
        _decoder_stack_kernel, num_heads=num_heads, head_dim=head_dim, eps=eps)

    est = _vmem_bytes_estimate(S, H, tile_f, x.dtype.itemsize)
    vmem_limit = int(min(max(2 * est, 32 * 1024 * 1024), 100 * 1024 * 1024))

    flops = 2 * B * depth * S * (4 * H * H + 2 * S * H + 2 * H * F)
    transcendentals = B * depth * (num_heads * S * S + S * F)
    bytes_accessed = (depth * (4 * H * H + 2 * H * F) * 2     # bf16 weights
                      + depth * 4 * H * 4                     # f32 LN params
                      + 2 * B * S * H * x.dtype.itemsize      # activations in + out
                      + B * S * S * 4)                        # additive mask

    layer_idx = lambda b, l, f: (l, 0, 0)

    return pl.pallas_call(
        kernel,
        out_shape=jax.ShapeDtypeStruct((B, S, H), x.dtype),
        grid=(B, depth, n_ftiles),
        in_specs=[
            pl.BlockSpec((None, S, H), lambda b, l, f: (b, 0, 0)),           # x
            pl.BlockSpec((None, None, S, S), lambda b, l, f: (b, 0, 0, 0)),  # mask
            pl.BlockSpec((None, 1, H), layer_idx),                           # ln1_w
            pl.BlockSpec((None, 1, H), layer_idx),                           # ln1_b
            pl.BlockSpec((None, H, H), layer_idx),                           # wq
            pl.BlockSpec((None, H, H), layer_idx),                           # wk
            pl.BlockSpec((None, H, H), layer_idx),                           # wv
            pl.BlockSpec((None, H, H), layer_idx),                           # wo
            pl.BlockSpec((None, 1, H), layer_idx),                           # ln2_w
            pl.BlockSpec((None, 1, H), layer_idx),                           # ln2_b
            pl.BlockSpec((None, H, tile_f), lambda b, l, f: (l, 0, f)),      # w1 tile
            pl.BlockSpec((None, tile_f, H), lambda b, l, f: (l, f, 0)),      # w2 tile
        ],
        out_specs=pl.BlockSpec((None, S, H), lambda b, l, f: (b, 0, 0)),
        scratch_shapes=[
            pltpu.VMEM((S, H), jnp.float32),   # residual stream
            pltpu.VMEM((S, H), jnp.float32),   # attn context assembly / LN2 output
            pltpu.VMEM((S, H), jnp.float32),   # FFN accumulator
        ],
        compiler_params=pltpu.CompilerParams(
            dimension_semantics=("parallel", "arbitrary", "arbitrary"),
            vmem_limit_bytes=vmem_limit,
        ),
        cost_estimate=pl.CostEstimate(
            flops=int(flops),
            transcendentals=int(transcendentals),
            bytes_accessed=int(bytes_accessed),
        ),
    )(
        x, attention_mask,
        params["ln1_w"], params["ln1_b"],
        params["wq"], params["wk"], params["wv"], params["wo"],
        params["ln2_w"], params["ln2_b"],
        params["w1"], params["w2"],
    )


# ----------------------------------------------------------------------------
# PraxisDecoder equivalent (host-side orchestration stays in plain JAX/Python)
# ----------------------------------------------------------------------------
class PraxisDecoderPallas:
    def __init__(self, *, depth, hidden, num_heads, ffn_mult=4, strategy="speed", seed=0):
        self.depth = depth
        self.hidden = hidden
        self.num_heads = num_heads
        ffn = ffn_mult * hidden
        scale = 0.02
        key = jax.random.PRNGKey(seed)
        keys = jax.random.split(key, 6 * depth).reshape(depth, 6, 2)

        def init(k, shape):
            # matmul weights stored bf16 (halves HBM traffic + VMEM residency)
            return (scale * jax.random.normal(k, shape, jnp.float32)).astype(jnp.bfloat16)

        self.params = dict(
            ln1_w=jnp.ones((depth, 1, hidden), jnp.float32),
            ln1_b=jnp.zeros((depth, 1, hidden), jnp.float32),
            ln2_w=jnp.ones((depth, 1, hidden), jnp.float32),
            ln2_b=jnp.zeros((depth, 1, hidden), jnp.float32),
            wq=jnp.stack([init(keys[l, 0], (hidden, hidden)) for l in range(depth)]),
            wk=jnp.stack([init(keys[l, 1], (hidden, hidden)) for l in range(depth)]),
            wv=jnp.stack([init(keys[l, 2], (hidden, hidden)) for l in range(depth)]),
            wo=jnp.stack([init(keys[l, 3], (hidden, hidden)) for l in range(depth)]),
            w1=jnp.stack([init(keys[l, 4], (hidden, ffn)) for l in range(depth)]),
            w2=jnp.stack([init(keys[l, 5], (ffn, hidden)) for l in range(depth)]),
        )

        # mirror _define_checkpoints (inference path never checkpoints)
        self.checkpoint_indices = []
        if strategy == "aggressive":
            self.checkpoint_indices = list(range(depth))
        elif strategy == "balanced":
            self.checkpoint_indices = [i for i in range(depth) if i % 4 == 0]

    def __call__(self, inputs, current_state, attention_mask,
                 past_key_values=None, block_ids=None):
        hidden_states = praxis_decoder_forward(
            inputs, attention_mask, self.params, num_heads=self.num_heads)
        # each (dense, router-free) expert contributes a zero aux loss
        aux_losses = [jnp.float32(0.0) for _ in range(self.depth)]
        return hidden_states, past_key_values, current_state, sum(aux_losses)


# ----------------------------------------------------------------------------
# Pure-JAX reference with matching numerics (for a correctness check)
# ----------------------------------------------------------------------------
def _reference_forward(x, attention_mask, params, *, num_heads, eps=1e-5):
    B, S, H = x.shape
    depth = params["wq"].shape[0]
    hd = H // num_heads
    bf16, f32 = jnp.bfloat16, jnp.float32

    def ln(h, w, b):
        mu = jnp.mean(h, axis=-1, keepdims=True)
        var = jnp.mean((h - mu) ** 2, axis=-1, keepdims=True)
        return (h - mu) * jax.lax.rsqrt(var + eps) * w + b

    h = x.astype(f32)
    for l in range(depth):
        xn16 = ln(h, params["ln1_w"][l], params["ln1_b"][l]).astype(bf16)
        q = jnp.einsum("bsh,hk->bsk", xn16, params["wq"][l],
                       preferred_element_type=f32) * (1.0 / (hd ** 0.5))
        k = jnp.einsum("bsh,hk->bsk", xn16, params["wk"][l], preferred_element_type=f32)
        v = jnp.einsum("bsh,hk->bsk", xn16, params["wv"][l], preferred_element_type=f32)
        q = q.reshape(B, S, num_heads, hd).transpose(0, 2, 1, 3)
        k = k.reshape(B, S, num_heads, hd).transpose(0, 2, 1, 3)
        v = v.reshape(B, S, num_heads, hd).transpose(0, 2, 1, 3)
        scores = jnp.einsum("bnqd,bnkd->bnqk", q.astype(bf16), k.astype(bf16),
                            preferred_element_type=f32) + attention_mask.astype(f32)
        p = jax.nn.softmax(scores, axis=-1)
        ctx = jnp.einsum("bnqk,bnkd->bnqd", p.astype(bf16), v.astype(bf16),
                         preferred_element_type=f32)
        attn = ctx.transpose(0, 2, 1, 3).reshape(B, S, H)
        attn = jnp.einsum("bsh,hk->bsk", attn.astype(bf16), params["wo"][l],
                          preferred_element_type=f32)
        h1 = h + attn
        hn16 = ln(h1, params["ln2_w"][l], params["ln2_b"][l]).astype(bf16)
        up = jnp.einsum("bsh,hf->bsf", hn16, params["w1"][l], preferred_element_type=f32)
        up = jax.nn.gelu(up, approximate=True)
        down = jnp.einsum("bsf,fh->bsh", up.astype(bf16), params["w2"][l],
                          preferred_element_type=f32)
        h = h1 + down
    return h.astype(x.dtype)


# ----------------------------------------------------------------------------
if __name__ == "__main__":
    B, S, H = 2, 8, 32
    NUM_HEADS = 2
    DEPTH = 2

    key = jax.random.PRNGKey(0)
    k_in, _ = jax.random.split(key)
    inputs = jax.random.normal(k_in, (B, S, H), jnp.float32)

    # additive causal attention mask (0 on/below diagonal, -1e9 above)
    causal = jnp.tril(jnp.ones((S, S), jnp.float32))
    attention_mask = jnp.where(causal == 1.0, 0.0, -1e9)[None, None, :, :]
    attention_mask = jnp.broadcast_to(attention_mask, (B, 1, S, S))

    decoder = PraxisDecoderPallas(depth=DEPTH, hidden=H, num_heads=NUM_HEADS, seed=0)

    hidden_states, past_kv, state, aux = decoder(inputs, None, attention_mask)
    jax.block_until_ready(hidden_states)
    jax.block_until_ready(aux)

    assert hidden_states.shape == (B, S, H)

    expected = _reference_forward(inputs, attention_mask, decoder.params,
                                  num_heads=NUM_HEADS)
    max_err = float(jnp.max(jnp.abs(hidden_states.astype(jnp.float32)
                                    - expected.astype(jnp.float32))))
    assert max_err < 2e-2, f"max abs error vs reference: {max_err}"

    print("KERNEL_OK")
</pallas_src>

<mosaic_0001>
module attributes {stable_mosaic.version = 11 : i64} {
  func.func @_decoder_stack_kernel(%arg0: i32, %arg1: i32, %arg2: i32, %arg3: memref<1x8x32xf32, #tpu.memory_space<vmem>>, %arg4: memref<1x1x8x8xf32, #tpu.memory_space<vmem>>, %arg5: memref<1x1x32xf32, #tpu.memory_space<vmem>>, %arg6: memref<1x1x32xf32, #tpu.memory_space<vmem>>, %arg7: memref<1x32x32xbf16, #tpu.memory_space<vmem>>, %arg8: memref<1x32x32xbf16, #tpu.memory_space<vmem>>, %arg9: memref<1x32x32xbf16, #tpu.memory_space<vmem>>, %arg10: memref<1x32x32xbf16, #tpu.memory_space<vmem>>, %arg11: memref<1x1x32xf32, #tpu.memory_space<vmem>>, %arg12: memref<1x1x32xf32, #tpu.memory_space<vmem>>, %arg13: memref<1x32x128xbf16, #tpu.memory_space<vmem>>, %arg14: memref<1x128x32xbf16, #tpu.memory_space<vmem>>, %arg15: memref<1x8x32xf32, #tpu.memory_space<vmem>>, %arg16: memref<8x32xf32, #tpu.memory_space<vmem>>, %arg17: memref<8x32xf32, #tpu.memory_space<vmem>>, %arg18: memref<8x32xf32, #tpu.memory_space<vmem>>) attributes {dimension_semantics = [#tpu.dimension_semantics<parallel>, #tpu.dimension_semantics<arbitrary>, #tpu.dimension_semantics<arbitrary>], iteration_bounds = array<i64: 2, 2, 1>, scalar_prefetch = 0 : i64, scratch_operands = 3 : i64, tpu.core_type = #tpu.core_type<tc>, window_params = [{transform_indices = @transform_0, window_bounds = array<i64: 1, 8, 32>}, {transform_indices = @transform_1, window_bounds = array<i64: 1, 1, 8, 8>}, {transform_indices = @transform_2, window_bounds = array<i64: 1, 1, 32>}, {transform_indices = @transform_3, window_bounds = array<i64: 1, 1, 32>}, {transform_indices = @transform_4, window_bounds = array<i64: 1, 32, 32>}, {transform_indices = @transform_5, window_bounds = array<i64: 1, 32, 32>}, {transform_indices = @transform_6, window_bounds = array<i64: 1, 32, 32>}, {transform_indices = @transform_7, window_bounds = array<i64: 1, 32, 32>}, {transform_indices = @transform_8, window_bounds = array<i64: 1, 1, 32>}, {transform_indices = @transform_9, window_bounds = array<i64: 1, 1, 32>}, {transform_indices = @transform_10, window_bounds = array<i64: 1, 32, 128>}, {transform_indices = @transform_11, window_bounds = array<i64: 1, 128, 32>}, {transform_indices = @transform_12, window_bounds = array<i64: 1, 8, 32>}]} {
    %c0_i32 = arith.constant 0 : i32
    %0 = arith.cmpi eq, %arg1, %c0_i32 : i32
    %c0_i32_0 = arith.constant 0 : i32
    %1 = arith.cmpi eq, %arg2, %c0_i32_0 : i32
    %2 = arith.andi %0, %1 : i1
    %3 = arith.extui %2 : i1 to i32
    %c0_i32_1 = arith.constant 0 : i32
    %4 = arith.cmpi ne, %3, %c0_i32_1 : i32
    scf.if %4 {
      %c0_24 = arith.constant 0 : index
      %c0_25 = arith.constant 0 : index
      %c0_26 = arith.constant 0 : index
      %41 = vector.load %arg3[%c0_24, %c0_25, %c0_26] : memref<1x8x32xf32, #tpu.memory_space<vmem>>, vector<1x8x32xf32>
      %42 = vector.shape_cast %41 : vector<1x8x32xf32> to vector<8x32xf32>
      %c0_27 = arith.constant 0 : index
      %c0_28 = arith.constant 0 : index
      %43 = vector.load %arg16[%c0_27, %c0_28] : memref<8x32xf32, #tpu.memory_space<vmem>>, vector<8x32xf32>
      tpu.vector_store %arg16[%c0_27, %c0_28], %42 {strides = array<i32>} : memref<8x32xf32, #tpu.memory_space<vmem>>, vector<8x32xf32>,
    } else {
    }
    %c0_i32_2 = arith.constant 0 : i32
    %5 = arith.cmpi eq, %arg2, %c0_i32_2 : i32
    %6 = arith.extui %5 : i1 to i32
    %c0_i32_3 = arith.constant 0 : i32
    %7 = arith.cmpi ne, %6, %c0_i32_3 : i32
    scf.if %7 {
      %c0_24 = arith.constant 0 : index
      %c0_25 = arith.constant 0 : index
      %41 = vector.load %arg16[%c0_24, %c0_25] : memref<8x32xf32, #tpu.memory_space<vmem>>, vector<8x32xf32>
      %c0_26 = arith.constant 0 : index
      %c0_27 = arith.constant 0 : index
      %c0_28 = arith.constant 0 : index
      %42 = vector.load %arg5[%c0_26, %c0_27, %c0_28] : memref<1x1x32xf32, #tpu.memory_space<vmem>>, vector<1x1x32xf32>
      %43 = vector.shape_cast %42 : vector<1x1x32xf32> to vector<1x32xf32>
      %c0_29 = arith.constant 0 : index
      %c0_30 = arith.constant 0 : index
      %c0_31 = arith.constant 0 : index
      %44 = vector.load %arg6[%c0_29, %c0_30, %c0_31] : memref<1x1x32xf32, #tpu.memory_space<vmem>>, vector<1x1x32xf32>
      %45 = vector.shape_cast %44 : vector<1x1x32xf32> to vector<1x32xf32>
      %cst_32 = arith.constant dense<0.000000e+00> : vector<8xf32>
      %46 = vector.multi_reduction <add>, %41, %cst_32 [1] : vector<8x32xf32> to vector<8xf32>
      %47 = vector.shape_cast %46 : vector<8xf32> to vector<8x1xf32>
      %cst_33 = arith.constant 3.200000e+01 : f32
      %48 = vector.broadcast %cst_33 : f32 to vector<8x1xf32>
      %49 = arith.divf %47, %48 : vector<8x1xf32>
      %50 = vector.broadcast %49 : vector<8x1xf32> to vector<8x32xf32>
      %51 = arith.subf %41, %50 : vector<8x32xf32>
      %52 = arith.mulf %51, %51 : vector<8x32xf32>
      %cst_34 = arith.constant dense<0.000000e+00> : vector<8xf32>
      %53 = vector.multi_reduction <add>, %52, %cst_34 [1] : vector<8x32xf32> to vector<8xf32>
      %54 = vector.shape_cast %53 : vector<8xf32> to vector<8x1xf32>
      %cst_35 = arith.constant 3.200000e+01 : f32
      %55 = vector.broadcast %cst_35 : f32 to vector<8x1xf32>
      %56 = arith.divf %54, %55 : vector<8x1xf32>
      %57 = vector.broadcast %49 : vector<8x1xf32> to vector<8x32xf32>
      %58 = arith.subf %41, %57 : vector<8x32xf32>
      %cst_36 = arith.constant 9.99999974E-6 : f32
      %59 = vector.broadcast %cst_36 : f32 to vector<8x1xf32>
      %60 = arith.addf %56, %59 : vector<8x1xf32>
      %61 = math.rsqrt %60 : vector<8x1xf32>
      %62 = vector.broadcast %61 : vector<8x1xf32> to vector<8x32xf32>
      %63 = arith.mulf %58, %62 : vector<8x32xf32>
      %64 = vector.broadcast %43 : vector<1x32xf32> to vector<8x32xf32>
      %65 = arith.mulf %63, %64 : vector<8x32xf32>
      %66 = vector.broadcast %45 : vector<1x32xf32> to vector<8x32xf32>
      %67 = arith.addf %65, %66 : vector<8x32xf32>
      %68 = arith.truncf %67 : vector<8x32xf32> to vector<8x32xbf16>
      %c0_37 = arith.constant 0 : index
      %c0_38 = arith.constant 0 : index
      %c0_39 = arith.constant 0 : index
      %69 = vector.load %arg7[%c0_37, %c0_38, %c0_39] : memref<1x32x32xbf16, #tpu.memory_space<vmem>>, vector<1x32x32xbf16>
      %70 = vector.shape_cast %69 : vector<1x32x32xbf16> to vector<32x32xbf16>
      %cst_40 = arith.constant dense<0.000000e+00> : vector<8x32xf32>
      %71 = tpu.matmul %68, %70, %cst_40 {dimension_numbers = #tpu.dot_dimension_numbers<[1], [0], [0], [1], [0, 0, 1, 1], [], []>} : vector<8x32xbf16>, vector<32x32xbf16>, vector<8x32xf32> -> vector<8x32xf32>
      %cst_41 = arith.constant 2.500000e-01 : f32
      %72 = vector.broadcast %cst_41 : f32 to vector<8x32xf32>
      %73 = arith.mulf %71, %72 : vector<8x32xf32>
      %c0_42 = arith.constant 0 : index
      %c0_43 = arith.constant 0 : index
      %c0_44 = arith.constant 0 : index
      %74 = vector.load %arg8[%c0_42, %c0_43, %c0_44] : memref<1x32x32xbf16, #tpu.memory_space<vmem>>, vector<1x32x32xbf16>
      %75 = vector.shape_cast %74 : vector<1x32x32xbf16> to vector<32x32xbf16>
      %cst_45 = arith.constant dense<0.000000e+00> : vector<8x32xf32>
      %76 = tpu.matmul %68, %75, %cst_45 {dimension_numbers = #tpu.dot_dimension_numbers<[1], [0], [0], [1], [0, 0, 1, 1], [], []>} : vector<8x32xbf16>, vector<32x32xbf16>, vector<8x32xf32> -> vector<8x32xf32>
      %c0_46 = arith.constant 0 : index
      %c0_47 = arith.constant 0 : index
      %c0_48 = arith.constant 0 : index
      %77 = vector.load %arg9[%c0_46, %c0_47, %c0_48] : memref<1x32x32xbf16, #tpu.memory_space<vmem>>, vector<1x32x32xbf16>
      %78 = vector.shape_cast %77 : vector<1x32x32xbf16> to vector<32x32xbf16>
      %cst_49 = arith.constant dense<0.000000e+00> : vector<8x32xf32>
      %79 = tpu.matmul %68, %78, %cst_49 {dimension_numbers = #tpu.dot_dimension_numbers<[1], [0], [0], [1], [0, 0, 1, 1], [], []>} : vector<8x32xbf16>, vector<32x32xbf16>, vector<8x32xf32> -> vector<8x32xf32>
      %80 = arith.truncf %73 : vector<8x32xf32> to vector<8x32xbf16>
      %81 = arith.truncf %76 : vector<8x32xf32> to vector<8x32xbf16>
      %82 = arith.truncf %79 : vector<8x32xf32> to vector<8x32xbf16>
      %c0_50 = arith.constant 0 : index
      %c0_51 = arith.constant 0 : index
      %c0_52 = arith.constant 0 : index
      %c0_53 = arith.constant 0 : index
      %83 = vector.load %arg4[%c0_50, %c0_51, %c0_52, %c0_53] : memref<1x1x8x8xf32, #tpu.memory_space<vmem>>, vector<1x1x8x8xf32>
      %84 = vector.shape_cast %83 : vector<1x1x8x8xf32> to vector<8x8xf32>
      %85 = vector.extract_strided_slice %80 {offsets = [0, 0], sizes = [8, 16], strides = [1, 1]} : vector<8x32xbf16> to vector<8x16xbf16>
      %86 = vector.extract_strided_slice %81 {offsets = [0, 0], sizes = [8, 16], strides = [1, 1]} : vector<8x32xbf16> to vector<8x16xbf16>
      %87 = vector.extract_strided_slice %82 {offsets = [0, 0], sizes = [8, 16], strides = [1, 1]} : vector<8x32xbf16> to vector<8x16xbf16>
      %cst_54 = arith.constant dense<0.000000e+00> : vector<8x8xf32>
      %88 = tpu.matmul %85, %86, %cst_54 {dimension_numbers = #tpu.dot_dimension_numbers<[1], [1], [0], [0], [0, 0, 1, 0], [], []>} : vector<8x16xbf16>, vector<8x16xbf16>, vector<8x8xf32> -> vector<8x8xf32>
      %89 = arith.addf %88, %84 : vector<8x8xf32>
      %cst_55 = arith.constant dense<0xFF800000> : vector<8xf32>
      %90 = vector.multi_reduction <maximumf>, %89, %cst_55 [1] : vector<8x8xf32> to vector<8xf32>
      %91 = vector.shape_cast %90 : vector<8xf32> to vector<8x1xf32>
      %92 = vector.broadcast %91 : vector<8x1xf32> to vector<8x8xf32>
      %93 = arith.subf %89, %92 : vector<8x8xf32>
      %94 = math.exp %93 : vector<8x8xf32>
      %cst_56 = arith.constant dense<0.000000e+00> : vector<8xf32>
      %95 = vector.multi_reduction <add>, %94, %cst_56 [1] : vector<8x8xf32> to vector<8xf32>
      %96 = vector.shape_cast %95 : vector<8xf32> to vector<8x1xf32>
      %97 = tpu.reciprocal %96 {approx = true} : vector<8x1xf32> -> vector<8x1xf32>
      %98 = vector.broadcast %97 : vector<8x1xf32> to vector<8x8xf32>
      %99 = arith.mulf %94, %98 : vector<8x8xf32>
      %100 = arith.truncf %99 : vector<8x8xf32> to vector<8x8xbf16>
      %cst_57 = arith.constant dense<0.000000e+00> : vector<8x16xf32>
      %101 = tpu.matmul %100, %87, %cst_57 {dimension_numbers = #tpu.dot_dimension_numbers<[1], [0], [0], [1], [0, 0, 1, 1], [], []>} : vector<8x8xbf16>, vector<8x16xbf16>, vector<8x16xf32> -> vector<8x16xf32>
      %c0_58 = arith.constant 0 : index
      %c0_59 = arith.constant 0 : index
      %102 = vector.load %arg17[%c0_58, %c0_59] : memref<8x32xf32, #tpu.memory_space<vmem>>, vector<8x16xf32>
      tpu.vector_store %arg17[%c0_58, %c0_59], %101 {strides = array<i32>} : memref<8x32xf32, #tpu.memory_space<vmem>>, vector<8x16xf32>,
      %103 = vector.extract_strided_slice %80 {offsets = [0, 16], sizes = [8, 16], strides = [1, 1]} : vector<8x32xbf16> to vector<8x16xbf16>
      %104 = vector.extract_strided_slice %81 {offsets = [0, 16], sizes = [8, 16], strides = [1, 1]} : vector<8x32xbf16> to vector<8x16xbf16>
      %105 = vector.extract_strided_slice %82 {offsets = [0, 16], sizes = [8, 16], strides = [1, 1]} : vector<8x32xbf16> to vector<8x16xbf16>
      %cst_60 = arith.constant dense<0.000000e+00> : vector<8x8xf32>
      %106 = tpu.matmul %103, %104, %cst_60 {dimension_numbers = #tpu.dot_dimension_numbers<[1], [1], [0], [0], [0, 0, 1, 0], [], []>} : vector<8x16xbf16>, vector<8x16xbf16>, vector<8x8xf32> -> vector<8x8xf32>
      %107 = arith.addf %106, %84 : vector<8x8xf32>
      %cst_61 = arith.constant dense<0xFF800000> : vector<8xf32>
      %108 = vector.multi_reduction <maximumf>, %107, %cst_61 [1] : vector<8x8xf32> to vector<8xf32>
      %109 = vector.shape_cast %108 : vector<8xf32> to vector<8x1xf32>
      %110 = vector.broadcast %109 : vector<8x1xf32> to vector<8x8xf32>
      %111 = arith.subf %107, %110 : vector<8x8xf32>
      %112 = math.exp %111 : vector<8x8xf32>
      %cst_62 = arith.constant dense<0.000000e+00> : vector<8xf32>
      %113 = vector.multi_reduction <add>, %112, %cst_62 [1] : vector<8x8xf32> to vector<8xf32>
      %114 = vector.shape_cast %113 : vector<8xf32> to vector<8x1xf32>
      %115 = tpu.reciprocal %114 {approx = true} : vector<8x1xf32> -> vector<8x1xf32>
      %116 = vector.broadcast %115 : vector<8x1xf32> to vector<8x8xf32>
      %117 = arith.mulf %112, %116 : vector<8x8xf32>
      %118 = arith.truncf %117 : vector<8x8xf32> to vector<8x8xbf16>
      %cst_63 = arith.constant dense<0.000000e+00> : vector<8x16xf32>
      %119 = tpu.matmul %118, %105, %cst_63 {dimension_numbers = #tpu.dot_dimension_numbers<[1], [0], [0], [1], [0, 0, 1, 1], [], []>} : vector<8x8xbf16>, vector<8x16xbf16>, vector<8x16xf32> -> vector<8x16xf32>
      %c0_64 = arith.constant 0 : index
      %c16 = arith.constant 16 : index
      %120 = vector.load %arg17[%c0_64, %c16] : memref<8x32xf32, #tpu.memory_space<vmem>>, vector<8x16xf32>
      tpu.vector_store %arg17[%c0_64, %c16], %119 {strides = array<i32>} : memref<8x32xf32, #tpu.memory_space<vmem>>, vector<8x16xf32>,
      %c0_65 = arith.constant 0 : index
      %c0_66 = arith.constant 0 : index
      %121 = vector.load %arg17[%c0_65, %c0_66] : memref<8x32xf32, #tpu.memory_space<vmem>>, vector<8x32xf32>
      %122 = arith.truncf %121 : vector<8x32xf32> to vector<8x32xbf16>
      %c0_67 = arith.constant 0 : index
      %c0_68 = arith.constant 0 : index
      %c0_69 = arith.constant 0 : index
      %123 = vector.load %arg10[%c0_67, %c0_68, %c0_69] : memref<1x32x32xbf16, #tpu.memory_space<vmem>>, vector<1x32x32xbf16>
      %124 = vector.shape_cast %123 : vector<1x32x32xbf16> to vector<32x32xbf16>
      %cst_70 = arith.constant dense<0.000000e+00> : vector<8x32xf32>
      %125 = tpu.matmul %122, %124, %cst_70 {dimension_numbers = #tpu.dot_dimension_numbers<[1], [0], [0], [1], [0, 0, 1, 1], [], []>} : vector<8x32xbf16>, vector<32x32xbf16>, vector<8x32xf32> -> vector<8x32xf32>
      %126 = arith.addf %41, %125 : vector<8x32xf32>
      %c0_71 = arith.constant 0 : index
      %c0_72 = arith.constant 0 : index
      %127 = vector.load %arg16[%c0_71, %c0_72] : memref<8x32xf32, #tpu.memory_space<vmem>>, vector<8x32xf32>
      tpu.vector_store %arg16[%c0_71, %c0_72], %126 {strides = array<i32>} : memref<8x32xf32, #tpu.memory_space<vmem>>, vector<8x32xf32>,
      %c0_73 = arith.constant 0 : index
      %c0_74 = arith.constant 0 : index
      %c0_75 = arith.constant 0 : index
      %128 = vector.load %arg11[%c0_73, %c0_74, %c0_75] : memref<1x1x32xf32, #tpu.memory_space<vmem>>, vector<1x1x32xf32>
      %129 = vector.shape_cast %128 : vector<1x1x32xf32> to vector<1x32xf32>
      %c0_76 = arith.constant 0 : index
      %c0_77 = arith.constant 0 : index
      %c0_78 = arith.constant 0 : index
      %130 = vector.load %arg12[%c0_76, %c0_77, %c0_78] : memref<1x1x32xf32, #tpu.memory_space<vmem>>, vector<1x1x32xf32>
      %131 = vector.shape_cast %130 : vector<1x1x32xf32> to vector<1x32xf32>
      %cst_79 = arith.constant dense<0.000000e+00> : vector<8xf32>
      %132 = vector.multi_reduction <add>, %126, %cst_79 [1] : vector<8x32xf32> to vector<8xf32>
      %133 = vector.shape_cast %132 : vector<8xf32> to vector<8x1xf32>
      %cst_80 = arith.constant 3.200000e+01 : f32
      %134 = vector.broadcast %cst_80 : f32 to vector<8x1xf32>
      %135 = arith.divf %133, %134 : vector<8x1xf32>
      %136 = vector.broadcast %135 : vector<8x1xf32> to vector<8x32xf32>
      %137 = arith.subf %126, %136 : vector<8x32xf32>
      %138 = arith.mulf %137, %137 : vector<8x32xf32>
      %cst_81 = arith.constant dense<0.000000e+00> : vector<8xf32>
      %139 = vector.multi_reduction <add>, %138, %cst_81 [1] : vector<8x32xf32> to vector<8xf32>
      %140 = vector.shape_cast %139 : vector<8xf32> to vector<8x1xf32>
      %cst_82 = arith.constant 3.200000e+01 : f32
      %141 = vector.broadcast %cst_82 : f32 to vector<8x1xf32>
      %142 = arith.divf %140, %141 : vector<8x1xf32>
      %143 = vector.broadcast %135 : vector<8x1xf32> to vector<8x32xf32>
      %144 = arith.subf %126, %143 : vector<8x32xf32>
      %cst_83 = arith.constant 9.99999974E-6 : f32
      %145 = vector.broadcast %cst_83 : f32 to vector<8x1xf32>
      %146 = arith.addf %142, %145 : vector<8x1xf32>
      %147 = math.rsqrt %146 : vector<8x1xf32>
      %148 = vector.broadcast %147 : vector<8x1xf32> to vector<8x32xf32>
      %149 = arith.mulf %144, %148 : vector<8x32xf32>
      %150 = vector.broadcast %129 : vector<1x32xf32> to vector<8x32xf32>
      %151 = arith.mulf %149, %150 : vector<8x32xf32>
      %152 = vector.broadcast %131 : vector<1x32xf32> to vector<8x32xf32>
      %153 = arith.addf %151, %152 : vector<8x32xf32>
      %c0_84 = arith.constant 0 : index
      %c0_85 = arith.constant 0 : index
      %154 = vector.load %arg17[%c0_84, %c0_85] : memref<8x32xf32, #tpu.memory_space<vmem>>, vector<8x32xf32>
      tpu.vector_store %arg17[%c0_84, %c0_85], %153 {strides = array<i32>} : memref<8x32xf32, #tpu.memory_space<vmem>>, vector<8x32xf32>,
      %cst_86 = arith.constant 0.000000e+00 : f32
      %155 = vector.broadcast %cst_86 : f32 to vector<8x32xf32>
      %c0_87 = arith.constant 0 : index
      %c0_88 = arith.constant 0 : index
      %156 = vector.load %arg18[%c0_87, %c0_88] : memref<8x32xf32, #tpu.memory_space<vmem>>, vector<8x32xf32>
      tpu.vector_store %arg18[%c0_87, %c0_88], %155 {strides = array<i32>} : memref<8x32xf32, #tpu.memory_space<vmem>>, vector<8x32xf32>,
    } else {
    }
    %c0 = arith.constant 0 : index
    %c0_4 = arith.constant 0 : index
    %8 = vector.load %arg17[%c0, %c0_4] : memref<8x32xf32, #tpu.memory_space<vmem>>, vector<8x32xf32>
    %9 = arith.truncf %8 : vector<8x32xf32> to vector<8x32xbf16>
    %c0_5 = arith.constant 0 : index
    %c0_6 = arith.constant 0 : index
    %c0_7 = arith.constant 0 : index
    %10 = vector.load %arg13[%c0_5, %c0_6, %c0_7] : memref<1x32x128xbf16, #tpu.memory_space<vmem>>, vector<1x32x128xbf16>
    %11 = vector.shape_cast %10 : vector<1x32x128xbf16> to vector<32x128xbf16>
    %cst = arith.constant dense<0.000000e+00> : vector<8x128xf32>
    %12 = tpu.matmul %9, %11, %cst {dimension_numbers = #tpu.dot_dimension_numbers<[1], [0], [0], [1], [0, 0, 1, 1], [], []>} : vector<8x32xbf16>, vector<32x128xbf16>, vector<8x128xf32> -> vector<8x128xf32>
    %13 = arith.mulf %12, %12 : vector<8x128xf32>
    %14 = arith.mulf %12, %13 : vector<8x128xf32>
    %cst_8 = arith.constant 4.471500e-02 : f32
    %15 = vector.broadcast %cst_8 : f32 to vector<8x128xf32>
    %16 = arith.mulf %15, %14 : vector<8x128xf32>
    %17 = arith.addf %12, %16 : vector<8x128xf32>
    %cst_9 = arith.constant 0.797884583 : f32
    %18 = vector.broadcast %cst_9 : f32 to vector<8x128xf32>
    %19 = arith.mulf %18, %17 : vector<8x128xf32>
    %20 = math.tanh %19 : vector<8x128xf32>
    %cst_10 = arith.constant 1.000000e+00 : f32
    %21 = vector.broadcast %cst_10 : f32 to vector<8x128xf32>
    %22 = arith.addf %21, %20 : vector<8x128xf32>
    %cst_11 = arith.constant 5.000000e-01 : f32
    %23 = vector.broadcast %cst_11 : f32 to vector<8x128xf32>
    %24 = arith.mulf %23, %22 : vector<8x128xf32>
    %25 = arith.mulf %12, %24 : vector<8x128xf32>
    %c0_12 = arith.constant 0 : index
    %c0_13 = arith.constant 0 : index
    %26 = vector.load %arg18[%c0_12, %c0_13] : memref<8x32xf32, #tpu.memory_space<vmem>>, vector<8x32xf32>
    %27 = arith.truncf %25 : vector<8x128xf32> to vector<8x128xbf16>
    %c0_14 = arith.constant 0 : index
    %c0_15 = arith.constant 0 : index
    %c0_16 = arith.constant 0 : index
    %28 = vector.load %arg14[%c0_14, %c0_15, %c0_16] : memref<1x128x32xbf16, #tpu.memory_space<vmem>>, vector<1x128x32xbf16>
    %29 = vector.shape_cast %28 : vector<1x128x32xbf16> to vector<128x32xbf16>
    %cst_17 = arith.constant dense<0.000000e+00> : vector<8x32xf32>
    %30 = tpu.matmul %27, %29, %cst_17 {dimension_numbers = #tpu.dot_dimension_numbers<[1], [0], [0], [1], [0, 0, 1, 1], [], []>} : vector<8x128xbf16>, vector<128x32xbf16>, vector<8x32xf32> -> vector<8x32xf32>
    %31 = arith.addf %26, %30 : vector<8x32xf32>
    %c0_18 = arith.constant 0 : index
    %c0_19 = arith.constant 0 : index
    %32 = vector.load %arg18[%c0_18, %c0_19] : memref<8x32xf32, #tpu.memory_space<vmem>>, vector<8x32xf32>
    tpu.vector_store %arg18[%c0_18, %c0_19], %31 {strides = array<i32>} : memref<8x32xf32, #tpu.memory_space<vmem>>, vector<8x32xf32>,
    %c0_i32_20 = arith.constant 0 : i32
    %33 = arith.cmpi eq, %arg2, %c0_i32_20 : i32
    %34 = arith.extui %33 : i1 to i32
    %c0_i32_21 = arith.constant 0 : i32
    %35 = arith.cmpi ne, %34, %c0_i32_21 : i32
    scf.if %35 {
      %c0_24 = arith.constant 0 : index
      %c0_25 = arith.constant 0 : index
      %41 = vector.load %arg16[%c0_24, %c0_25] : memref<8x32xf32, #tpu.memory_space<vmem>>, vector<8x32xf32>
      %c0_26 = arith.constant 0 : index
      %c0_27 = arith.constant 0 : index
      %42 = vector.load %arg18[%c0_26, %c0_27] : memref<8x32xf32, #tpu.memory_space<vmem>>, vector<8x32xf32>
      %43 = arith.addf %41, %42 : vector<8x32xf32>
      %c0_28 = arith.constant 0 : index
      %c0_29 = arith.constant 0 : index
      %44 = vector.load %arg16[%c0_28, %c0_29] : memref<8x32xf32, #tpu.memory_space<vmem>>, vector<8x32xf32>
      tpu.vector_store %arg16[%c0_28, %c0_29], %43 {strides = array<i32>} : memref<8x32xf32, #tpu.memory_space<vmem>>, vector<8x32xf32>,
    } else {
    }
    %c0_i32_22 = arith.constant 0 : i32
    %36 = arith.cmpi eq, %arg2, %c0_i32_22 : i32
    %c1_i32 = arith.constant 1 : i32
    %37 = arith.cmpi eq, %arg1, %c1_i32 : i32
    %38 = arith.andi %36, %37 : i1
    %39 = arith.extui %38 : i1 to i32
    %c0_i32_23 = arith.constant 0 : i32
    %40 = arith.cmpi ne, %39, %c0_i32_23 : i32
    scf.if %40 {
      %c0_24 = arith.constant 0 : index
      %c0_25 = arith.constant 0 : index
      %41 = vector.load %arg16[%c0_24, %c0_25] : memref<8x32xf32, #tpu.memory_space<vmem>>, vector<8x32xf32>
      %c0_26 = arith.constant 0 : index
      %c0_27 = arith.constant 0 : index
      %c0_28 = arith.constant 0 : index
      %42 = vector.load %arg15[%c0_26, %c0_27, %c0_28] : memref<1x8x32xf32, #tpu.memory_space<vmem>>, vector<1x8x32xf32>
      %43 = vector.shape_cast %42 : vector<1x8x32xf32> to vector<8x32xf32>
      %44 = vector.shape_cast %41 : vector<8x32xf32> to vector<1x8x32xf32>
      tpu.vector_store %arg15[%c0_26, %c0_27, %c0_28], %44 {strides = array<i32>} : memref<1x8x32xf32, #tpu.memory_space<vmem>>, vector<1x8x32xf32>,
    } else {
    }
    return
  }
  func.func @transform_0(%arg0: i32, %arg1: i32, %arg2: i32) -> (i32, i32, i32) {
    %c0_i32 = arith.constant 0 : i32
    %c0_i32_0 = arith.constant 0 : i32
    %c0_i32_1 = arith.constant 0 : i32
    return %arg0, %c0_i32, %c0_i32_0 : i32, i32, i32
  }
  func.func @transform_1(%arg0: i32, %arg1: i32, %arg2: i32) -> (i32, i32, i32, i32) {
    %c0_i32 = arith.constant 0 : i32
    %c0_i32_0 = arith.constant 0 : i32
    %c0_i32_1 = arith.constant 0 : i32
    %c0_i32_2 = arith.constant 0 : i32
    return %arg0, %c0_i32, %c0_i32_0, %c0_i32_1 : i32, i32, i32, i32
  }
  func.func @transform_2(%arg0: i32, %arg1: i32, %arg2: i32) -> (i32, i32, i32) {
    %c0_i32 = arith.constant 0 : i32
    %c0_i32_0 = arith.constant 0 : i32
    %c0_i32_1 = arith.constant 0 : i32
    return %arg1, %c0_i32, %c0_i32_0 : i32, i32, i32
  }
  func.func @transform_3(%arg0: i32, %arg1: i32, %arg2: i32) -> (i32, i32, i32) {
    %c0_i32 = arith.constant 0 : i32
    %c0_i32_0 = arith.constant 0 : i32
    %c0_i32_1 = arith.constant 0 : i32
    return %arg1, %c0_i32, %c0_i32_0 : i32, i32, i32
  }
  func.func @transform_4(%arg0: i32, %arg1: i32, %arg2: i32) -> (i32, i32, i32) {
    %c0_i32 = arith.constant 0 : i32
    %c0_i32_0 = arith.constant 0 : i32
    %c0_i32_1 = arith.constant 0 : i32
    return %arg1, %c0_i32, %c0_i32_0 : i32, i32, i32
  }
  func.func @transform_5(%arg0: i32, %arg1: i32, %arg2: i32) -> (i32, i32, i32) {
    %c0_i32 = arith.constant 0 : i32
    %c0_i32_0 = arith.constant 0 : i32
    %c0_i32_1 = arith.constant 0 : i32
    return %arg1, %c0_i32, %c0_i32_0 : i32, i32, i32
  }
  func.func @transform_6(%arg0: i32, %arg1: i32, %arg2: i32) -> (i32, i32, i32) {
    %c0_i32 = arith.constant 0 : i32
    %c0_i32_0 = arith.constant 0 : i32
    %c0_i32_1 = arith.constant 0 : i32
    return %arg1, %c0_i32, %c0_i32_0 : i32, i32, i32
  }
  func.func @transform_7(%arg0: i32, %arg1: i32, %arg2: i32) -> (i32, i32, i32) {
    %c0_i32 = arith.constant 0 : i32
    %c0_i32_0 = arith.constant 0 : i32
    %c0_i32_1 = arith.constant 0 : i32
    return %arg1, %c0_i32, %c0_i32_0 : i32, i32, i32
  }
  func.func @transform_8(%arg0: i32, %arg1: i32, %arg2: i32) -> (i32, i32, i32) {
    %c0_i32 = arith.constant 0 : i32
    %c0_i32_0 = arith.constant 0 : i32
    %c0_i32_1 = arith.constant 0 : i32
    return %arg1, %c0_i32, %c0_i32_0 : i32, i32, i32
  }
  func.func @transform_9(%arg0: i32, %arg1: i32, %arg2: i32) -> (i32, i32, i32) {
    %c0_i32 = arith.constant 0 : i32
    %c0_i32_0 = arith.constant 0 : i32
    %c0_i32_1 = arith.constant 0 : i32
    return %arg1, %c0_i32, %c0_i32_0 : i32, i32, i32
  }
  func.func @transform_10(%arg0: i32, %arg1: i32, %arg2: i32) -> (i32, i32, i32) {
    %c0_i32 = arith.constant 0 : i32
    %c0_i32_0 = arith.constant 0 : i32
    return %arg1, %c0_i32, %arg2 : i32, i32, i32
  }
  func.func @transform_11(%arg0: i32, %arg1: i32, %arg2: i32) -> (i32, i32, i32) {
    %c0_i32 = arith.constant 0 : i32
    %c0_i32_0 = arith.constant 0 : i32
    return %arg1, %arg2, %c0_i32 : i32, i32, i32
  }
  func.func @transform_12(%arg0: i32, %arg1: i32, %arg2: i32) -> (i32, i32, i32) {
    %c0_i32 = arith.constant 0 : i32
    %c0_i32_0 = arith.constant 0 : i32
    %c0_i32_1 = arith.constant 0 : i32
    return %arg0, %c0_i32, %c0_i32_0 : i32, i32, i32
  }
}

</mosaic_0001>

<bundles_post_ra>
// kernel: tpu_custom_call.1
= control target key start
LH: loop header
LB: loop body
LE: loop exit
PB: predicated region body
PF: predicated region fallthrough
CT: control target
= control target key end

     0   :  { %s2451_s0 = inlined_call_operand.hbm [shape: f32[2,8,32], index: 0, kind: input, shape index: {}]   ;;  %s2452_s1 = inlined_call_operand.hbm [shape: f32[2,1,8,8], index: 1, kind: input, shape index: {}]   ;;  %s2453_s2 = inlined_call_operand.hbm [shape: f32[2,1,32], index: 2, kind: input, shape index: {}]   ;;  %s2454_s3 = inlined_call_operand.hbm [shape: f32[2,1,32], index: 3, kind: input, shape index: {}]   ;;  %s2455_s4 = inlined_call_operand.vmem [shape: bf16[2,32,32], index: 4, kind: input, shape index: {}]   ;;  %s2456_s5 = inlined_call_operand.vmem [shape: bf16[2,32,32], index: 5, kind: input, shape index: {}]   ;;  %s2457_s6 = inlined_call_operand.vmem [shape: bf16[2,32,32], index: 6, kind: input, shape index: {}]   ;;  %s2458_s7 = inlined_call_operand.vmem [shape: bf16[2,32,32], index: 7, kind: input, shape index: {}]   ;;  %s2459_s8 = inlined_call_operand.vmem [shape: f32[2,1,32], index: 8, kind: input, shape index: {}]   ;;  %s2460_s9 = inlined_call_operand.vmem [shape: f32[2,1,32], index: 9, kind: input, shape index: {}]   ;;  %s2461_s10 = inlined_call_operand.vmem [shape: bf16[2,32,128], index: 10, kind: input, shape index: {}]   ;;  %s2462_s11 = inlined_call_operand.vmem [shape: bf16[2,128,32], index: 11, kind: input, shape index: {}]   ;;  %s2463_s12 = inlined_call_operand.hbm [shape: f32[2,8,32], index: 12, kind: output, shape index: {}]  }
   0x1   :  { %2476 = sst [smem:[#allocation30_spill]] %s2451_s0 }
   0x2   :  { %2477 = sst [smem:[#allocation31_spill]] %s2452_s1 }
   0x3   :  { %2478 = sst [smem:[#allocation32_spill]] %s2453_s2 }
   0x4   :  { %2479 = sst [smem:[#allocation33_spill]] %s2454_s3 }
   0x5   :  { %2480 = sst [smem:[#allocation34_spill]] %s2455_s4 }
   0x6   :  { %2481 = sst [smem:[#allocation35_spill]] %s2456_s5 }
   0x7   :  { %2482 = sst [smem:[#allocation36_spill]] %s2457_s6 }
   0x8   :  { %2483 = sst [smem:[#allocation37_spill]] %s2458_s7 }
   0x9   :  { %2484 = sst [smem:[#allocation38_spill]] %s2459_s8 }
   0xa   :  { %2485 = sst [smem:[#allocation39_spill]] %s2460_s9 }
   0xb   :  { %2486 = sst [smem:[#allocation40_spill]] %s2461_s10 }
   0xc   :  { %2487 = sst [smem:[#allocation41_spill]] %s2462_s11 }
   0xd   :  { %2488 = sst [smem:[#allocation42_spill]] %s2463_s12 }
   0xe   :  { %17 = vsyncpa [#allocation6], 0 }
   0xf   :  { %19 = vsyncpa [#allocation6 + $0x1], 0 }
  0x10   :  { %20 = vsyncpa [#allocation9], 0 }
  0x11   :  { %22 = vsyncpa [#allocation9 + $0x1], 0 }
  0x12   :  { %23 = vsyncpa [#allocation12], 0 }
  0x13   :  { %25 = vsyncpa [#allocation12 + $0x1], 0 }
  0x14   :  { %26 = vsyncpa [#allocation7], 0 }
  0x15   :  { %28 = vsyncpa [#allocation7 + $0x1], 0  ;;  %s2078_s21 = smov 0   ;;  %s2080_s22 = smov 0  }
  0x16   :  { %s2082_s23 = smov 0   ;;  %s2084_s24 = smov 0  }
  0x17   :  { %s2086_s25 = smov 0   ;;  %s2088_s26 = smov 0  }
  0x18   :  { %s2090_s27 = smov 0   ;;  %s2092_s28 = smov 0  }
  0x19   :  { %s2094_s29 = smov 0   ;;  %s2096_s30 = smov 0  }
  0x1a   :  { %s2098_s13 = smov 0  }
  0x1b LB: > { %2489 = sst [smem:[#allocation19_spill]] %s1979_s24  ;;  %s2132_s14 = sadd.s32 4294967295, %s2007_s13   ;;  %s2007_s13 = sphi %s2098_s13, %s34_s13   ;;  %s2003_s30 = sphi %s2096_s30, %s2541_s30   ;;  %s1999_s29 = sphi %s2094_s29, %s2540_s29   ;;  %s1995_s28 = sphi %s2092_s28, %s2539_s28   ;;  %s1991_s27 = sphi %s2090_s27, %s2538_s27   ;;  %s1987_s26 = sphi %s2088_s26, %s2537_s26   ;;  %s1983_s25 = sphi %s2086_s25, %s2546_s25   ;;  %s1979_s24 = sphi %s2084_s24, %s2545_s24   ;;  %s1975_s23 = sphi %s2082_s23, %s2544_s23   ;;  %s1971_s22 = sphi %s2080_s22, %s2543_s22   ;;  %s1967_s21 = sphi %s2078_s21, %s2542_s21  }
  0x1c   : > { %2490 = sst [smem:[#allocation20_spill]] %s1987_s26  ;;  %s1476_s15 = sadd.s32 4294967294, %s2007_s13  }
  0x1d   : > { %2491 = sst [smem:[#allocation21_spill]] %s1995_s28  ;;  %p67_p0 = scmp.ne.s32.totalorder %s1987_s26, %s1983_s25 }
  0x1e   : > { %2492 = sst [smem:[#allocation22_spill]] %s1999_s29  ;;  %p68_p1 = scmp.eq.s32.totalorder %s2007_s13, 0 }
  0x1f   : > { %2493 = sst [smem:[#allocation23_spill]] %s2003_s30  ;;  %p73_p2 = scmp.ne.s32.totalorder %s1983_s25, %s1979_s24 }
  0x20   : > { %2494 = sst [smem:[#allocation24_spill]] %s2007_s13  ;;  %p74_p3 = scmp.eq.s32.totalorder %s2132_s14, 0 }
  0x21   : > { %p2143_p4 = por %p68_p1, %p67_p0  ;;  %p119_p5 = scmp.ne.s32.totalorder %s1975_s23, %s1971_s22 }
  0x22   : > { %p2149_p6 = por %p74_p3, %p73_p2  ;;  %p125_p7 = scmp.ne.s32.totalorder %s1971_s22, %s1967_s21 }
  0x23   : > { %p2154_p8 = por %p119_p5, %p68_p1  ;;  %p387_p9 = scmp.eq.s32.totalorder %s2132_s14, 3 }
  0x24   : > { %p2159_p10 = por %p125_p7, %p74_p3  ;;  %p393_p11 = scmp.eq.s32.totalorder %s1476_s15, 3 }
  0x25   : > { %p2163_p12 = por %p387_p9, %p67_p0  ;;  %p1639_p1 = scmp.lt.s32.totalorder %s2007_s13, 4 }
  0x26   : > { %p2167_p13 = por %p393_p11, %p73_p2  ;;  %s413_s21 = sand.u32 1, %s1987_s26  }
  0x27   : > { %s2499_s16 = scalar_select %p2163_p12, 1, 0 }
  0x28   : > { %s2501_s24 = scalar_select %p2167_p13, 1, 0 }
  0x29   : > { %2500 = sst [smem:[#allocation25_spill]] %s2499_s16  ;;  %s1480_s12 = sshll.u32 %s2003_s30, 3 }
  0x2a   : > { %2502 = sst [smem:[#allocation26_spill]] %s2501_s24  ;;  %s1479_s28 = sshll.u32 %s413_s21, 3 }
  0x2b   : > { %p2176_p3 = pnand %p1639_p1, %p2143_p4  ;;  %s432_s15 = sand.u32 1, %s2007_s13  }
  0x2c   : > { %s2504_s1 = sld [smem:[#allocation31_spill]]  ;;  %s436_s7 = scalar_lea.vmem [#allocation8], %s1479_s28 }
  0x2d   : > { %s444_s6 = sshll.u32 %s436_s7, 4  ;;  %p2186_p0 = pnand %p1639_p1, %p2154_p8  ;;  %s445_s6 = int_to_ptr.vmem [resolvable:$true] %s444_s6 }
  0x2e   : > { %s2190_s5 = scalar_lea.sflag [#allocation9], %s432_s15  ;;  %p1483_p2 = scmp.ge.s32.totalorder %s2007_s13, 1 }
  0x2f   : > { %p551_p4 = scmp.lt.s32.totalorder %s2007_s13, 5  ;;  %s2507_s0 = sld [smem:[#allocation30_spill]] }
  0x30   : > { %s417_s20 = scalar_lea.vmem [#allocation5], %s1479_s28  ;;  %s49_s13 = sadd.s32 1, %s1999_s29 }
  0x31   : > { %p2197_p5 = pnand %p1483_p2, %p551_p4  ;;  %s425_s15 = sshll.u32 %s417_s20, 4  ;;  %s426_s15 = int_to_ptr.vmem [resolvable:$true] %s425_s15 }
  0x32   : > { %s440_s16 = scalar_lea.hbm %s2504_s1, %s1480_s12  ;;  %s453_s4 = sand.u32 1, %s1975_s23  }
  0x33   : > { %s442_s24 = sshll.u32 %s440_s16, 4  ;;  %p51_p7 = scmp.ge.s32.totalorder %s49_s13, 2  ;;  %s443_s24 = int_to_ptr.hbm [resolvable:$true] %s442_s24 }
  0x34   : > { %1628 = dma.hbm_to_vmem [thread:$0]  (!%p2176_p3), %s443_s24, 128, %s445_s6, %s2190_s5  }
  0x35   : > { %s421_s16 = scalar_lea.hbm %s2507_s0, %s1480_s12  ;;  %s414_s6 = scalar_lea.sflag [#allocation6], %s413_s21 }
  0x36   : > { %s423_s1 = sshll.u32 %s421_s16, 4  ;;  %s112_s24 = sadd.s32 1, %s1975_s23  ;;  %s424_s1 = int_to_ptr.hbm [resolvable:$true] %s423_s1 }
  0x37   : > { %1625 = dma.hbm_to_vmem [thread:$0]  (!%p2176_p3), %s424_s1, 128, %s426_s15, %s414_s6  }
  0x38   : > { %s2508_s2 = sld [smem:[#allocation32_spill]]  ;;  %s454_s28 = scalar_lea.vmem [#allocation10], %s453_s4 }
  0x39   : > { %s461_s10 = sshll.u32 %s454_s28, 4  ;;  %s2548_s13 = smov (%p51_p7, %s49_s13), 0  ;;  %s462_s10 = int_to_ptr.vmem [resolvable:$true] %s461_s10 }
  0x3a   : > { %2509 = sst [smem:[#allocation27_spill]] %s2548_s13  ;;  %s2510_s1 = sadd.s32 1, %s2003_s30 }
  0x3b   : > { %s2550_s1 = smov (!%p51_p7, %s2510_s1), %s2003_s30  ;;  %s109_s11 = ssub.s32 %s1999_s29, %s2548_s13 }
  0x3c   : > { %p55_p8 = scmp.ge.s32.totalorder %s2550_s1, 2  ;;  %p110_p9 = scmp.eq.s32.totalorder %s109_s11, 0 }
  0x3d   : > { %s2512_s20 = sadd.s32 1, %s1987_s26  ;;  %s2514_s3 = sld [smem:[#allocation33_spill]] }
  0x3e   : > { %s457_s12 = scalar_lea.hbm %s2508_s2, %s1999_s29  ;;  %s2552_s1 = smov (%p55_p8, %s2550_s1), 0 }
  0x3f   : > { %s459_s21 = sshll.u32 %s457_s12, 4  ;;  %2511 = sst [smem:[#allocation28_spill]] %s2552_s1  ;;  %s460_s21 = int_to_ptr.hbm [resolvable:$true] %s459_s21 }
  0x40   : > { %s2223_s8 = scalar_select %p110_p9, %s1975_s23, %s112_s24  }
  0x41   : > { %s57_s16 = ssub.s32 %s2003_s30, %s2552_s1  ;;  %s471_s28 = scalar_lea.vmem [#allocation11], %s453_s4 }
  0x42   : > { %p58_p11 = scmp.eq.s32.totalorder %s57_s16, 0  ;;  %s478_s11 = sshll.u32 %s471_s28, 4  ;;  %s479_s11 = int_to_ptr.vmem [resolvable:$true] %s478_s11 }
  0x43   : > { %1631 = dma.hbm_to_vmem [thread:$0]  (!%p2186_p0), %s460_s21, 16, %s462_s10, %s2190_s5  }
  0x44   : > { %s2233_s15 = scalar_select %p58_p11, %s1987_s26, %s2512_s20  }
  0x45   : > { %s474_s12 = scalar_lea.hbm %s2514_s3, %s1999_s29  ;;  %s469_s2 = scalar_lea.sflag [#allocation12], %s453_s4 }
  0x46   : > { %2513 = sst [smem:[#allocation29_spill]] %s2233_s15  ;;  %s476_s0 = sshll.u32 %s474_s12, 4  ;;  %s477_s0 = int_to_ptr.hbm [resolvable:$true] %s476_s0 }
  0x47   : > { %1634 = dma.hbm_to_vmem [thread:$0]  (!%p2186_p0), %s477_s0, 16, %s479_s11, %s469_s2  }
  0x48   : > { %555 = sbr.rel (%p2197_p5) target bundleno = 2009 (0x7d9), region = 68  ;;  %s2244_s5 = sand.u32 (!%p2197_p5), 1, %s1983_s25  }
  0x49   : > { %s2247_s24 = sshll.u32 (!%p2197_p5), %s2244_s5, 3  ;;  %s558_s10 = scalar_lea.sflag (!%p2197_p5), [#allocation6], %s2244_s5 }
  0x4d   : > { %1946 = dma.done.wait (%p2149_p6), %s558_s10, 128  }
  0x4e   : > { %1948 = vsyncadd (%p2149_p6), %s558_s10, 4294967168  ;;  %s567_s0 = sand.u32 1, %s2132_s14  }
  0x4f   : > { %s568_s2 = scalar_lea.sflag [#allocation9], %s567_s0 }
  0x50   : > { %1950 = dma.done.wait (%p2149_p6), %s568_s2, 128  }
  0x51   : > { %1952 = vsyncadd (%p2149_p6), %s568_s2, 4294967168  ;;  %s2262_s18 = sand.u32 1, %s1971_s22  }
  0x52   : > { %1954 = dma.done.wait (%p2159_p10), %s568_s2, 16  }
  0x53   : > { %1956 = vsyncadd (%p2159_p10), %s568_s2, 4294967280  ;;  %s587_s14 = scalar_lea.sflag [#allocation12], %s2262_s18 }
  0x54   : > { %1958 = dma.done.wait (%p2159_p10), %s587_s14, 16  }
  0x55   : > { %1960 = vsyncadd (%p2159_p10), %s587_s14, 4294967280  ;;  %p687_p6 = scmp.lt.s32.totalorder %s1991_s27, 1  ;;  %p732_p1 = scmp.eq.s32.totalorder %s1991_s27, 0 }
  0x56   : > { %s2516_s10 = sld [smem:[#allocation34_spill]]  ;;  %s686_s7 = scalar_lea.vmem [#allocation13], %s2247_s24  ;;  %vm739_vm0 = vcmask (%p732_p1), 261120  }
  0x57   : > { %s2278_s19 = scalar_select %p687_p6, %s1991_s27, 1 }
  0x58   : > { %s2517_s4 = sld [smem:[#allocation35_spill]] }
  0x59   : > { %s1586_s20 = sshll.u32 %s2278_s19, 4  ;;  %s2518_s3 = sld [smem:[#allocation36_spill]] }
  0x5a   : > { %s2519_s29 = sld [smem:[#allocation37_spill]] }
  0x5b   : > { %s2520_s11 = sld [smem:[#allocation39_spill]] }
  0x5c   : > { %s2288_s0 = scalar_lea.vmem %s2516_s10, %s1586_s20  ;;  %s2521_s15 = sld [smem:[#allocation40_spill]] }
  0x5d   : > { %s2522_s21 = sld [smem:[#allocation41_spill]] }
  0x5e   : > { %s2293_s16 = scalar_lea.vmem %s2517_s4, %s1586_s20  ;;  %s1591_s4 = sshll.u32 %s2278_s19, 6 }
  0x5f   : > { %s2298_s1 = scalar_lea.vmem %s2518_s3, %s1586_s20  ;;  %737 = sbr.rel (!%p732_p1) target bundleno = 100 (0x64), region = 88 }
  0x60   : > { %s2303_s6 = scalar_lea.vmem %s2519_s29, %s1586_s20  ;;  %s2523_s29 = scalar_lea.vmem (%p732_p1), [#allocation5], %s2247_s24 }
  0x61   : > { %s712_s17 = scalar_lea.vmem %s2520_s11, %s2278_s19  ;;  %v738_v0 = vld [vmem:[%s2523_s29] sm:$0xff] (%p732_p1) }
  0x62   : > { %s2312_s2 = scalar_lea.vmem %s2521_s15, %s1586_s20  ;;  %740 = vst.msk [vmem:[#allocation2] sm:$0xff] (%p732_p1), %vm739_vm0, %v738_v0 }
  0x63   : > { %s2318_s3 = scalar_lea.vmem %s2522_s21, %s1591_s4 }
  0x64 PF: > { %vm747_vm1 = vcmask 261120   ;;  %v2009_v3 = vmov 32.0   ;;  %v1594_v15 = vld [vmem:[%s2288_s0 + $0x8] sm:$0xff]  ;;  %v1593_v17 = vld [vmem:[%s2288_s0] sm:$0xff]  ;;  %s2524_s26 = scalar_lea.vmem [#allocation10], %s2262_s18  ;;  %s2525_s30 = scalar_lea.vmem [#allocation11], %s2262_s18 }
  0x65   : > { %1737 = vrcp.f32 %v2009_v3  ;;  %v1596_v16 = vld [vmem:[%s2293_s16 + $0x8] sm:$0xff]  ;;  %811 = vmatpush.bf16.msra.mxu0 %v1594_v15  ;;  %v1595_v18 = vld [vmem:[%s2293_s16] sm:$0xff]  ;;  %vm881_vm6 = vcmask 130048   ;;  %s2010_s13 = smov 112   ;;  %vm917_vm7 = vcmask 1043456   ;;  %vm901_vm8 = vcmask 64512  }
  0x66   : > { %841 = vmatpush.bf16.msra.mxu2 %v1596_v16  ;;  %v1598_v19 = vld [vmem:[%s2298_s1 + $0x8] sm:$0xff]  ;;  %v1597_v22 = vld [vmem:[%s2298_s1] sm:$0xff]  ;;  %s2526_s1 = scalar_lea.vmem [#allocation8], %s2247_s24  ;;  %s2011_s15 = smov 16   ;;  %vm1004_vm9 = vcmask 261248  }
  0x67   : > { %v1733_v30 = vld [vmem:[%s2524_s26] ss:$0 sm:$0xff]  ;;  %v880_v62 = vld [vmem:[%s2526_s1] sm:$0xff]  ;;  %s2527_s20 = sld [smem:[#allocation38_spill]]  ;;  %p1208_p10 = scmp.eq.s32.totalorder %s1991_s27, 1 }
  0x68   : > { %v1734_v33 = vld [vmem:[%s2525_s30] ss:$0 sm:$0xff] }
  0x69   : > { %v2323_v1 = vld [vmem:[#allocation2] sm:$0xff]  ;;  %812 = vmatpush.bf16.msra.mxu0 %v1593_v17 }
  0x6a   : > { %v748_v2 = vsel %vm747_vm1, %v2323_v1, 0.0  ;;  %842 = vmatpush.bf16.msra.mxu2 %v1595_v18 }
  0x6b   : > { %749 = vadd.xlane.f32.xlu0 %v748_v2  ;;  %v1738_v4 = vpop.eup %1737 }
  0x6c   : > { %v752_v5 = vmul.f32 32.0, %v1738_v4  ;;  %vm756_vm2 = vweird.f32 %v1738_v4 }
  0x6d   : > { %s2528_s28 = scalar_lea.vmem %s2527_s20, %s2278_s19 }
  0x6e   : > { %v753_v6 = vsub.f32 1.0, %v752_v5  ;;  %870 = vmatpush.bf16.msrb.mxu2 %v1598_v19 }
  0x70   : > { %v754_v7 = vmul.f32 %v1738_v4, %v753_v6 }
  0x72   : > { %v755_v8 = vadd.f32 %v1738_v4, %v754_v7  ;;  %871 = vmatpush.bf16.msrb.mxu2 %v1597_v22 }
  0x74   : > { %v2327_v9 = vsel %vm756_vm2, %v1738_v4, %v755_v8 }
  0xde   : > { %v750_v10 = vpop.xlane.xlu0 %749 }
  0xdf   : > { %v758_v11 = vmul.f32 %v2327_v9, %v750_v10 }
  0xe1   : > { %v759_v12 = vsub.f32 %v2323_v1, %v758_v11 }
  0xe3   : > { %v760_v13 = vmul.f32 %v759_v12, %v759_v12 }
  0xe5   : > { %v761_v14 = vsel %vm747_vm1, %v760_v13, 0.0 }
  0xe6   : > { %762 = vadd.xlane.f32.xlu0 %v761_v14 }
 0x159   : > { %v763_v20 = vpop.xlane.xlu0 %762 }
 0x15a   : > { %v764_v21 = vmul.f32 %v763_v20, %v2327_v9 }
 0x15c   : > { %v765_v23 = vadd.f32 1e-05, %v764_v21 }
 0x15e   : > { %1739 = vrsqrt.f32 %v765_v23  ;;  %vm772_vm4 = vweird.f32 %v765_v23 }
 0x164   : > { %v1740_v24 = vpop.eup %1739 }
 0x165   : > { %v767_v25 = vmul.f32 %v1740_v24, %v765_v23  ;;  %vm773_vm3 = vweird.f32 %v1740_v24 }
 0x166   : > { %vm774_vm5 = vmor %vm772_vm4, %vm773_vm3 }
 0x167   : > { %v768_v26 = vmul.f32 %v1740_v24, %v767_v25  ;;  %v1600_v25 = vld [vmem:[%s2303_s6 + $0x8] sm:$0xff] }
 0x169   : > { %v769_v27 = vmul.f32 0.5, %v768_v26 }
 0x16b   : > { %v770_v28 = vsub.f32 1.5, %v769_v27 }
 0x16d   : > { %v771_v29 = vmul.f32 %v1740_v24, %v770_v28 }
 0x16f   : > { %v775_v31 = vsel %vm774_vm5, %v1740_v24, %v771_v29 }
 0x170   : > { %v776_v32 = vmul.f32 %v775_v31, %v759_v12 }
 0x172   : > { %v780_v34 = vmul.f32 %v1733_v30, %v776_v32  ;;  %v1599_v30 = vld [vmem:[%s2303_s6] sm:$0xff] }
 0x174   : > { %v784_v35 = vadd.f32 %v1734_v33, %v780_v34 }
 0x176   : > { %v785_v36 = vpack.c.bf16 %v784_v35, %v784_v35 }
 0x178   : > { %1508 = vmatmul.msk.bf16.vlgmr.msra.gmra.mxu0 %vm747_vm1, %v785_v36  ;;  %1517 = vmatmul.msk.bf16.vlgmr.msra.gmra.mxu2 %vm747_vm1, %v785_v36 }
 0x188   : > { %1526 = vmatmul.msk.bf16.vlgmr.msrb.gmra.mxu2 %vm747_vm1, %v785_v36 }
 0x1f5   : > { %v814_v37 = vpop.f32.mrf.mxu0 }
 0x1f6   : > { %v818_v39 = vmul.f32 0.25, %v814_v37 }
 0x1f8   : > { %v877_v44 = vpack.c.bf16 %v818_v39, %v818_v39 }
 0x1fa   : > { %v936_v47 = vunpack.c.l.b16 %v877_v44 }
 0x1fb   : > { %v844_v38 = vpop.f32.mrf.mxu2 }
 0x1fc   : > { %v878_v40 = vpack.c.bf16 %v844_v38, %v844_v38  ;;  %v937_v48 = vpack.c.b16 %v936_v47, %v936_v47  ;;  %v1610_v47 = vld [vmem:[%s2318_s3 + $0x38] sm:$0xff] }
 0x1fd   : > { %v816_v41 = vpop.f32.mrf.mxu0 }
 0x1fe   : > { %v886_v42 = vsel %vm881_vm6, %v878_v40, 0  ;;  %v941_v43 = vunpack.c.l.b16 %v878_v40 }
 0x1ff   : > { %895 = vmatpush.bf16.xpose.msra.mxu3 %v886_v42 }
 0x200   : > { %v942_v45 = vpack.c.b16 %v941_v43, %v941_v43  ;;  %v1602_v43 = vld [vmem:[%s2312_s2 + $0x8] sm:$0xff] }
 0x202   : > { %943 = vrot.lane.b32.xlu1 %v942_v45, %s2010_s13 }
 0x203   : > { %v846_v46 = vpop.f32.mrf.mxu2 }
 0x206   : > { %1527 = vmatmul.msk.bf16.vlgmr.msra.gmra.mxu3 %vm881_vm6, %v877_v44  ;;  %v1601_v44 = vld [vmem:[%s2312_s2] sm:$0xff] }
 0x207   : > { %1033 = vmatpush.bf16.msrb.mxu3 %v1600_v25 }
 0x20a   : > { %938 = vrot.lane.b32.xlu1 %v937_v48, %s2010_s13  ;;  %v1609_v48 = vld [vmem:[%s2318_s3 + $0x30] sm:$0xff] }
 0x20b   : > { %v873_v49 = vpop.f32.mrf.mxu2  ;;  %1034 = vmatpush.bf16.msrb.mxu3 %v1599_v30 }
 0x20c   : > { %v879_v50 = vpack.c.bf16 %v873_v49, %v873_v49 }
 0x20e   : > { %v977_v51 = vunpack.c.l.b16 %v879_v50  ;;  %v919_v52 = vsel %vm917_vm7, %v879_v50, 0 }
 0x20f   : > { %928 = vmatpush.bf16.msrb.mxu0 %v919_v52 }
 0x210   : > { %v978_v53 = vpack.c.b16 %v977_v51, %v977_v51 }
 0x212   : > { %979 = vrot.lane.b32.xlu1 %v978_v53, %s2010_s13 }
 0x213   : > { %v875_v54 = vpop.f32.mrf.mxu2  ;;  %1104 = vmatpush.bf16.msra.mxu0 %v1602_v43 }
 0x217   : > { %1105 = vmatpush.bf16.msra.mxu0 %v1601_v44 }
 0x274   : > { %v944_v55 = vpop.permute.xlu1 %943 }
 0x275   : > { %v949_v56 = vsel %vm881_vm6, %v944_v55, 0 }
 0x276   : > { %958 = vmatpush.bf16.xpose.msra.mxu1 %v949_v56  ;;  %v1736_v56 = vld [vmem:[%s712_s17] ss:$0 sm:$0xff] }
 0x27c   : > { %v939_v57 = vpop.permute.xlu1 %938 }
 0x27d   : > { %1529 = vmatmul.msk.bf16.vlgmr.msra.gmra.mxu1 %vm881_vm6, %v939_v57 }
 0x27e   : > { %1186 = vmatpush.bf16.msrb.mxu1 %v1610_v47 }
 0x282   : > { %1187 = vmatpush.bf16.msrb.mxu1 %v1609_v48 }
 0x284   : > { %v980_v58 = vpop.permute.xlu1 %979 }
 0x285   : > { %v985_v59 = vsel %vm917_vm7, %v980_v58, 0 }
 0x286   : > { %994 = vmatpush.bf16.msra.mxu2 %v985_v59 }
 0x289   : > { %v897_v60 = vpop.f32.mrf.mxu3 }
 0x28a   : > { %v898_v3 = vadd.f32 %v897_v60, %v880_v62 }
 0x28c   : > { %v902_v5 = vsel %vm901_vm8, %v898_v3, -inf }
 0x291   : > { %v899_v61 = vpop.f32.mrf.mxu3 }
 0x2fa   : > { %v960_v63 = vpop.f32.mrf.mxu1 }
 0x2fb   : > { %v961_v0 = vadd.f32 %v960_v63, %v880_v62  ;;  %v1608_v62 = vld [vmem:[%s2318_s3 + $0x28] sm:$0xff]  ;;  %v1607_v63 = vld [vmem:[%s2318_s3 + $0x20] sm:$0xff] }
 0x2fc   : > { %1188 = vmatpush.bf16.msrb.mxu1 %v1608_v62 }
 0x2fd   : > { %v964_v2 = vsel %vm901_vm8, %v961_v0, -inf }
 0x2fe   : > { %965 = vmax.xlane.f32.xlu2 %v964_v2  ;;  %v1605_v2 = vld [vmem:[%s2318_s3 + $0x10] sm:$0xff] }
 0x300   : > { %1189 = vmatpush.bf16.msrb.mxu1 %v1607_v63 }
 0x302   : > { %v962_v4 = vpop.f32.mrf.mxu1 }
 0x303   : > { %v1603_v4 = vld [vmem:[%s2318_s3] sm:$0xff] }
 0x306   : > { %903 = vmax.xlane.f32.xlu2 %v902_v5  ;;  %v2012_v5 = vmov 0.0  }
 0x307   : > { %1075 = vst.msk [vmem:[#allocation4] sm:$0xff] %vm747_vm1, %v2012_v5 }
 0x371   : > { %v966_v6 = vpop.xlane.xlu2 %965 }
 0x372   : > { %v967_v7 = vsub.f32 %v961_v0, %v966_v6  ;;  %v1606_v0 = vld [vmem:[%s2318_s3 + $0x18] sm:$0xff] }
 0x373   : > { %1190 = vmatpush.bf16.msrb.mxu1 %v1606_v0 }
 0x374   : > { %v968_v8 = vmul.f32 1.442695, %v967_v7 }
 0x376   : > { %1741 = vpow2.f32 %v968_v8 }
 0x377   : > { %1191 = vmatpush.bf16.msrb.mxu1 %v1605_v2 }
 0x379   : > { %v904_v10 = vpop.xlane.xlu2 %903 }
 0x37a   : > { %v905_v11 = vsub.f32 %v898_v3, %v904_v10  ;;  %v1604_v3 = vld [vmem:[%s2318_s3 + $0x8] sm:$0xff] }
 0x37b   : > { %1192 = vmatpush.bf16.msrb.mxu1 %v1604_v3 }
 0x37c   : > { %v1742_v12 = vpop.eup %1741  ;;  %v906_v13 = vmul.f32 1.442695, %v905_v11 }
 0x37d   : > { %v970_v14 = vsel %vm901_vm8, %v1742_v12, 0.0 }
 0x37e   : > { %1743 = vpow2.f32 %v906_v13  ;;  %971 = vadd.xlane.f32.xlu0 %v970_v14 }
 0x37f   : > { %1193 = vmatpush.bf16.msrb.mxu1 %v1603_v4 }
 0x384   : > { %v1744_v15 = vpop.eup %1743 }
 0x385   : > { %v908_v16 = vsel %vm901_vm8, %v1744_v15, 0.0 }
 0x386   : > { %909 = vadd.xlane.f32.xlu2 %v908_v16 }
 0x3f1   : > { %v972_v17 = vpop.xlane.xlu0 %971 }
 0x3f2   : > { %1745 = vrcp.f32 %v972_v17 }
 0x3f8   : > { %v1746_v18 = vpop.eup %1745 }
 0x3f9   : > { %v974_v19 = vmul.f32 %v1746_v18, %v1742_v12  ;;  %v910_v20 = vpop.xlane.xlu2 %909 }
 0x3fa   : > { %1747 = vrcp.f32 %v910_v20 }
 0x3fb   : > { %v975_v21 = vpack.c.bf16 %v974_v19, %v974_v19  ;;  %v1120_v19 = vld [vmem:[#allocation4] sm:$0xff] }
 0x3fd   : > { %1530 = vmatmul.msk.bf16.vlgmr.msra.gmra.mxu2 %vm901_vm8, %v975_v21 }
 0x400   : > { %v1748_v22 = vpop.eup %1747 }
 0x401   : > { %v912_v23 = vmul.f32 %v1748_v22, %v1744_v15 }
 0x403   : > { %v913_v24 = vpack.c.bf16 %v912_v23, %v912_v23 }
 0x405   : > { %1528 = vmatmul.msk.bf16.vlgmr.msrb.gmra.mxu0 %vm901_vm8, %v913_v24 }
 0x480   : > { %v996_v26 = vpop.f32.mrf.mxu2 }
 0x481   : > { %1001 = vrot.lane.b32.xlu0 %v996_v26, %s2011_s15 }
 0x482   : > { %v930_v27 = vpop.f32.mrf.mxu0 }
 0x483   : > { %934 = vst.msk [vmem:[#allocation3] sm:$0xff] %vm881_vm6, %v930_v27 }
 0x488   : > { %v998_v28 = vpop.f32.mrf.mxu2 }
 0x48a   : > { %v932_v29 = vpop.f32.mrf.mxu0 }
 0x4f3   : > { %v1002_v31 = vpop.permute.xlu0 %1001 }
 0x4f4   : > { %1005 = vst.msk [vmem:[#allocation3] sm:$0xff] %vm1004_vm9, %v1002_v31 }
 0x4fb   : > { %v1006_v32 = vld [vmem:[#allocation3] sm:$0xff] }
 0x4fc   : > { %v1007_v33 = vpack.c.bf16 %v1006_v32, %v1006_v32 }
 0x4fe   : > { %1539 = vmatmul.msk.bf16.vlgmr.msrb.gmra.mxu3 %vm747_vm1, %v1007_v33 }
 0x581   : > { %v1036_v34 = vpop.f32.mrf.mxu3 }
 0x582   : > { %v1040_v35 = vadd.f32 %v1036_v34, %v2323_v1 }
 0x584   : > { %1041 = vst.msk [vmem:[#allocation2] sm:$0xff] %vm747_vm1, %v1040_v35  ;;  %v1044_v36 = vsel %vm747_vm1, %v1040_v35, 0.0 }
 0x585   : > { %1045 = vadd.xlane.f32.xlu1 %v1044_v36 }
 0x589   : > { %v1038_v37 = vpop.f32.mrf.mxu3 }
 0x58b   : > { %v1204_v23 = vld [vmem:[#allocation2] sm:$0xff] }
 0x5f8   : > { %v1046_v38 = vpop.xlane.xlu1 %1045 }
 0x5f9   : > { %v1047_v39 = vmul.f32 %v1046_v38, %v2327_v9 }
 0x5fb   : > { %v1048_v40 = vsub.f32 %v1040_v35, %v1047_v39 }
 0x5fd   : > { %v1049_v41 = vmul.f32 %v1048_v40, %v1048_v40 }
 0x5ff   : > { %v1050_v42 = vsel %vm747_vm1, %v1049_v41, 0.0 }
 0x600   : > { %1051 = vadd.xlane.f32.xlu2 %v1050_v42 }
 0x673   : > { %v1052_v1 = vpop.xlane.xlu2 %1051 }
 0x674   : > { %v1053_v45 = vmul.f32 %v1052_v1, %v2327_v9  ;;  %v1735_v9 = vld [vmem:[%s2528_s28] ss:$0 sm:$0xff] }
 0x676   : > { %v1054_v46 = vadd.f32 1e-05, %v1053_v45 }
 0x678   : > { %1749 = vrsqrt.f32 %v1054_v46  ;;  %vm1061_vm11 = vweird.f32 %v1054_v46 }
 0x67e   : > { %v1750_v49 = vpop.eup %1749 }
 0x67f   : > { %v1056_v50 = vmul.f32 %v1750_v49, %v1054_v46  ;;  %vm1062_vm10 = vweird.f32 %v1750_v49 }
 0x680   : > { %vm1063_vm12 = vmor %vm1061_vm11, %vm1062_vm10 }
 0x681   : > { %v1057_v51 = vmul.f32 %v1750_v49, %v1056_v50 }
 0x683   : > { %v1058_v52 = vmul.f32 0.5, %v1057_v51 }
 0x685   : > { %v1059_v53 = vsub.f32 1.5, %v1058_v52 }
 0x687   : > { %v1060_v54 = vmul.f32 %v1750_v49, %v1059_v53 }
 0x689   : > { %v1064_v55 = vsel %vm1063_vm12, %v1750_v49, %v1060_v54 }
 0x68a   : > { %v1065_v57 = vmul.f32 %v1064_v55, %v1048_v40 }
 0x68c   : > { %v1069_v58 = vmul.f32 %v1735_v9, %v1065_v57 }
 0x68e   : > { %v1073_v59 = vadd.f32 %v1736_v56, %v1069_v58 }
 0x690   : > { %1074 = vst.msk [vmem:[#allocation3] sm:$0xff] %vm747_vm1, %v1073_v59 }
 0x697   : > { %v1076_v60 = vld [vmem:[#allocation3] sm:$0xff] }
 0x698   : > { %v1077_v61 = vpack.c.bf16 %v1076_v60, %v1076_v60 }
 0x69a   : > { %1548 = vmatmul.msk.bf16.vlgmr.msra.gmra.mxu0 %vm747_vm1, %v1077_v61 }
 0x717   : > { %v1107_v6 = vpop.f32.mrf.mxu0 }
 0x718   : > { %v1111_v7 = vmul.f32 %v1107_v6, %v1107_v6 }
 0x71a   : > { %v1112_v8 = vmul.f32 %v1111_v7, %v1107_v6 }
 0x71c   : > { %v1113_v10 = vmul.f32 0.044715, %v1112_v8 }
 0x71e   : > { %v1114_v11 = vadd.f32 %v1113_v10, %v1107_v6 }
 0x71f   : > { %v1109_v12 = vpop.f32.mrf.mxu0 }
 0x720   : > { %v1115_v13 = vmul.f32 0.7978846, %v1114_v11 }
 0x722   : > { %1751 = vtanh.f32 %v1115_v13 }
 0x728   : > { %v1752_v14 = vpop.eup %1751 }
 0x729   : > { %v1117_v15 = vadd.f32 1.0, %v1752_v14 }
 0x72b   : > { %v1118_v16 = vmul.f32 0.5, %v1117_v15 }
 0x72d   : > { %v1119_v17 = vmul.f32 %v1118_v16, %v1107_v6 }
 0x72f   : > { %v1121_v18 = vpack.c.bf16 %v1119_v17, %v1119_v17 }
 0x731   : > { %1194 = vmatmul.bf16.vlgmr.msrb.gmra.mxu1 %v1121_v18 }
 0x7ae   : > { %v1195_v20 = vpop.f32.mrf.mxu1 }
 0x7af   : > { %v1199_v21 = vadd.f32 %v1195_v20, %v1120_v19 }
 0x7b1   : > { %1200 = vst.msk [vmem:[#allocation4] sm:$0xff] %vm747_vm1, %v1199_v21 }
 0x7b6   : > { %v1197_v22 = vpop.f32.mrf.mxu1 }
 0x7b7   : > { %1212 = sbr.rel (!%p1208_p10) target bundleno = 1988 (0x7c4), region = 100 }
 0x7b8   : > { %v1205_v24 = vld [vmem:[#allocation4] sm:$0xff] }
 0x7b9   : > { %v1206_v25 = vadd.f32 %v1205_v24, %v1204_v23 }
 0x7bb   : > { %1207 = vst.msk [vmem:[#allocation2] sm:$0xff] %vm747_vm1, %v1206_v25 }
 0x7c2   : > { %v1213_v26 = vld [vmem:[#allocation2] sm:$0xff] }
 0x7c3   : > { %1214 = vst.msk [vmem:[%s686_s7] sm:$0xff] %vm747_vm1, %v1213_v26 }
 0x7c4 PF: > { %s2530_s19 = sld [smem:[#allocation21_spill]]  ;;  %s1228_s4 = sshll.u32 %s686_s7, 4  ;;  %s1229_s4 = int_to_ptr.vmem [resolvable:$true] %s1228_s4 }
 0x7c5   : > { %s2532_s10 = sld [smem:[#allocation42_spill]]  ;;  %s1216_s21 = scalar_lea.sflag [#allocation7], %s2244_s5 }
 0x7ca   : > { %s1583_s12 = sshll.u32 %s2530_s19, 3 }
 0x7cb   : > { %s1226_s2 = scalar_lea.hbm %s2532_s10, %s1583_s12  ;;  %s1893_s13 = scalar_lea.hbm %s2532_s10, 16 }
 0x7cc   : > { %s1230_s14 = sshll.u32 %s1226_s2, 4  ;;  %s1231_s14 = int_to_ptr.hbm [resolvable:$true] %s1230_s14 }
 0x7cd   : > { %s1887_s3 = sshra.s32 %s1231_s14, 4  ;;  %s1888_s3 = int_to_ptr.hbm [resolvable:$true] %s1887_s3 }
 0x7ce   : > { %s1889_s29 = scalar_lea.hbm %s1888_s3, 8  ;;  %p1894_p4 = scmp.lt.s32.totalorder %s1888_s3, %s2532_s10 }
 0x7cf   : > { %p1890_p3 = scmp.ne.s32.totalorder %s1888_s3, %s1889_s29  ;;  %p1895_p5 = scmp.lt.s32.totalorder %s1893_s13, %s1889_s29 }
 0x7d1   : > { %p1891_p0 = pnand %p1890_p3, %p2163_p12  ;;  %p1896_p7 = por %p1895_p5, %p1894_p4 }
 0x7d3   : > { %p1892_p2 = pneg %p1891_p0 }
 0x7d5   : > { %p1897_p8 = pnand %p1896_p7, %p1892_p2 }
 0x7d7   : > { %1900 = shalt.err (!%p1897_p8)
}
 0x7d8   : > { %1620 = dma.vmem_to_hbm [thread:$0]  (%p2163_p12), %s1229_s4, 128, %s1231_s14, %s1216_s21  }
 0x7d9 PF: > { %s2533_s5 = sld [smem:[#allocation24_spill]] }
 0x7da   : > { %s2534_s24 = sld [smem:[#allocation19_spill]] }
 0x7df   : > { %p1640_p9 = scmp.ge.s32.totalorder %s2533_s5, 2 }
 0x7e0   : > { %s1242_s18 = sand.u32 1, %s2534_s24  }
 0x7e1   : > { %p1636_p11 = pnand %p1640_p9, %p2167_p13  ;;  %s1243_s16 = scalar_lea.sflag [#allocation7], %s1242_s18 }
 0x7e3   : > { %p1637_p6 = pneg %p1636_p11 }
 0x7e5   : > { %1962 = dma.done.wait (%p1637_p6), %s1243_s16, 128  }
 0x7e6   : > { %1964 = vsyncadd (%p1637_p6), %s1243_s16, 4294967168  ;;  %s34_s13 = sadd.s32 1, %s2533_s5   ;;  %s2536_s20 = sld [smem:[#allocation20_spill]] }
 0x7e7   : > { %p31_p1 = scmp.ge.s32.totalorder %s34_s13, 6   ;;  %s2537_s26 = sld [smem:[#allocation29_spill]] }
 0x7e8   : > { %s2538_s27 = sld [smem:[#allocation22_spill]]  ;;  %s2542_s21 = smov %s1971_s22 }
 0x7e9   : > { %s2539_s28 = sld [smem:[#allocation23_spill]]  ;;  %s2543_s22 = smov %s1975_s23 }
 0x7ea   : > { %s2540_s29 = sld [smem:[#allocation27_spill]]  ;;  %s2544_s23 = smov %s2223_s8 }
 0x7eb   : > { %s2541_s30 = sld [smem:[#allocation28_spill]]  ;;  %s2545_s24 = smov %s1983_s25 }
 0x7ec   : > { %s2546_s25 = smov %s2536_s20  ;;  %33 = sbr.rel (!%p31_p1) target bundleno = 27 (0x1b), region = 190 }
 0x7f1   :  { %1249 = vsyncpa [#allocation6], 1 }
 0x7f2   :  { %1251 = vsyncpa [#allocation6 + $0x1], 1 }
 0x7f3   :  { %1252 = vsyncpa [#allocation9], 1 }
 0x7f4   :  { %1254 = vsyncpa [#allocation9 + $0x1], 1 }
 0x7f5   :  { %1255 = vsyncpa [#allocation12], 1 }
 0x7f6   :  { %1257 = vsyncpa [#allocation12 + $0x1], 1 }
 0x7f7   :  { %1258 = vsyncpa [#allocation7], 1 }
 0x7f8   :  { %1260 = vsyncpa [#allocation7 + $0x1], 1 }

</bundles_post_ra>
